<compile_context>
chip_gen: v6e
topology: v6e:2x2x1
jax: 0.10.0
libtpu: 0.0.40
codegen_flags: <defaults>
</compile_context>

<pallas_src>
import jax
import jax.numpy as jnp
from jax.experimental import pallas as pl
from jax.experimental.pallas import tpu as pltpu


# ------------------------------ kernel ------------------------------------ #

def _fused_kernel(x_ref, wm_ref, out_ref):
    """One batch-lane tile of the fully folded ConcatenatedModel forward.

    x_ref  : (16, TB) f32  rows 0:8  = x_spat (seq rows stacked, feats on sublanes)
                           rows 8:16 = x_spec (seq rows stacked)
    wm_ref : (10, 12) f32  cols 0:8 = block-diag(fc_spatial.weight x2)
                           col 8 = stacked spatial bias
                           col 9 = fused (fc1 . fc2) weights for the ReLU branch
                           col 10 = fused spectral->fc1->fc2 weights (rows 0:8)
                           col 11 = fused bias constant (row 0)
    out_ref: (1, TB) f32   batch on lanes (lane-dense, unmasked stores)
    """
    f32 = jnp.float32
    x_spat = x_ref[0:8, :]            # (8, TB)
    x_spec = x_ref[8:16, :]           # (8, TB)
    wm = wm_ref[...]                  # (10, 12)

    w_stack = wm[:, 0:8]              # (10, 8)
    b_stack = wm[:, 8:9]              # (10, 1)
    v = wm[:, 9:10]                   # (10, 1)
    e = wm[0:8, 10:11]                # (8, 1)
    c = wm[0:1, 11:12]                # (1, 1)

    # ReLU (spatial) branch: both sequence rows in one small MXU matmul.
    # TODO(synk): on v5e, if the fp32 dot saturates the vector-extended slot
    # at large tiles, cast operands to bf16 (preferred_element_type=f32).
    h = jnp.maximum(
        jnp.dot(w_stack, x_spat, preferred_element_type=f32) + b_stack, 0.0
    )                                 # (10, TB)

    # Thin contractions as VPU broadcast-muls + sublane reductions.
    spat = jnp.sum(v * h, axis=0, keepdims=True)          # (1, TB)
    spec = jnp.sum(e * x_spec, axis=0, keepdims=True)     # (1, TB)

    out_ref[...] = spat + spec + c


# --------------------------- parameter folding ----------------------------- #

def _fold_params(params):
    """Fold fc1/fc2 (and the linear spectral branch) into a single (10, 12)
    kernel operand. Exact up to f32 reassociation."""
    f32 = jnp.float32
    wsp = params["w_spat"].astype(f32)      # (5, 4)
    bsp = params["b_spat"].astype(f32)      # (5,)
    wse = params["w_spec"].astype(f32)      # (5, 4)
    bse = params["b_spec"].astype(f32)      # (5,)
    w1t = params["w1"].astype(f32).T        # (20, 5)
    b1 = params["b1"].astype(f32)           # (5,)
    w2t = params["w2"].astype(f32).T        # (5, 1)
    b2 = params["b2"].astype(f32)           # (1,)

    g = w1t @ w2t                           # (20, 1): fc1 folded into fc2
    a, bm, c1, c2 = g[0:5], g[5:10], g[10:15], g[15:20]

    b_stack = jnp.concatenate([bsp, bsp], axis=0)                  # (10,)
    v = jnp.concatenate([a, bm], axis=0)[:, 0]                     # (10,)
    e = jnp.concatenate([wse.T @ c1, wse.T @ c2], axis=0)[:, 0]    # (8,)
    const = (b1 @ w2t)[0] + b2[0] + (bse @ (c1 + c2))[0]           # scalar

    wm = jnp.zeros((10, 12), f32)
    wm = wm.at[0:5, 0:4].set(wsp).at[5:10, 4:8].set(wsp)
    wm = wm.at[:, 8].set(b_stack)
    wm = wm.at[:, 9].set(v)
    wm = wm.at[0:8, 10].set(e)
    wm = wm.at[0, 11].set(const)
    return wm


# ------------------------------ wrappers ----------------------------------- #

_PREFERRED_TILE = 65536      # ~4 MiB input block; x2 buffering well under VMEM
_SINGLE_TILE_MAX = 16384     # below this, one grid step beats any split


def _round_up(x, m):
    return ((x + m - 1) // m) * m


def _choose_batch_tile(B, requested):
    if requested is not None:
        bt = min(int(requested), B)
        if bt < B:
            assert bt % 128 == 0, "batch_tile must be a multiple of 128 when tiling"
        return bt
    if B <= _SINGLE_TILE_MAX:
        return B
    # Large B: big lane-aligned tiles, but capped at ~B/2 so there are always
    # >= 2 parallel grid steps (lets v7x shard across both TensorCores).
    half = _round_up(pl.cdiv(B, 2), 128)
    return min(_PREFERRED_TILE, half)


def pack_inputs(x_spat, x_spec):
    """Pack (B,2,4)+(B,2,4) into the feature-major (16, B) slab the kernel
    consumes.  This is one extra HBM pass; produce this layout upstream and
    call `concat_model_forward_packed` directly whenever possible."""
    B = x_spat.shape[0]
    assert x_spat.shape == (B, 2, 4) and x_spec.shape == (B, 2, 4)
    return jnp.concatenate(
        [x_spat.reshape(B, 8), x_spec.reshape(B, 8)], axis=1
    ).astype(jnp.float32).T          # (16, B)


def concat_model_forward_packed(x_packed, params, *, batch_tile=None):
    """Forward pass from the feature-major (16, B) slab (preferred entry)."""
    assert x_packed.ndim == 2 and x_packed.shape[0] == 16
    B = x_packed.shape[1]
    x_packed = x_packed.astype(jnp.float32)

    wm = _fold_params(params)
    bt = _choose_batch_tile(B, batch_tile)
    num_tiles = pl.cdiv(B, bt)

    # Double-buffered input/output blocks plus small headroom; documents the
    # VMEM budget and keeps v7x (64 MiB physical) trivially safe.
    in_block = 16 * bt * 4
    out_block = 1 * bt * 4
    vmem_limit = min(32 * 1024 * 1024, max(4 * 1024 * 1024, 4 * (in_block + out_block)))

    out = pl.pallas_call(
        _fused_kernel,
        out_shape=jax.ShapeDtypeStruct((1, B), jnp.float32),
        grid=(num_tiles,),
        in_specs=[
            pl.BlockSpec((16, bt), lambda i: (0, i)),
            pl.BlockSpec((10, 12), lambda i: (0, 0)),
        ],
        out_specs=pl.BlockSpec((1, bt), lambda i: (0, i)),
        compiler_params=pltpu.CompilerParams(
            dimension_semantics=("parallel",),
            vmem_limit_bytes=int(vmem_limit),
        ),
    )(x_packed, wm)

    return out[0, :B].reshape(B, 1)


def concat_model_forward(x_spat, x_spec, params, *, batch_tile=None):
    """PyTorch-signature-compatible wrapper: (B,2,4), (B,2,4) -> (B,1)."""
    return concat_model_forward_packed(
        pack_inputs(x_spat, x_spec), params, batch_tile=batch_tile
    )


# ------------------------------ reference ---------------------------------- #

def reference_forward(x_spat, x_spec, params):
    """Pure-JAX reference mirroring the PyTorch forward exactly."""
    h_spat = jax.nn.relu(
        jnp.einsum("bsf,of->bso", x_spat, params["w_spat"]) + params["b_spat"])
    h_spec = jnp.einsum("bsf,of->bso", x_spec, params["w_spec"]) + params["b_spec"]
    cat = jnp.concatenate([h_spat, h_spec], axis=1)          # (B, 4, 5)
    flat = cat.reshape(cat.shape[0], -1)                     # (B, 20)
    h1 = flat @ params["w1"].T + params["b1"]                # (B, 5)
    return h1 @ params["w2"].T + params["b2"]                # (B, 1)


def init_params(key):
    ks = jax.random.split(key, 8)

    def u(k, shape, fan_in):
        bound = 1.0 / jnp.sqrt(fan_in)
        return jax.random.uniform(k, shape, jnp.float32, -bound, bound)

    return {
        "w_spat": u(ks[0], (5, 4), 4.0), "b_spat": u(ks[1], (5,), 4.0),
        "w_spec": u(ks[2], (5, 4), 4.0), "b_spec": u(ks[3], (5,), 4.0),
        "w1":     u(ks[4], (5, 20), 20.0), "b1":   u(ks[5], (5,), 20.0),
        "w2":     u(ks[6], (1, 5), 5.0),  "b2":   u(ks[7], (1,), 5.0),
    }


# -------------------------------- demo ------------------------------------- #

if __name__ == "__main__":
    key = jax.random.PRNGKey(0)
    k_p, k_xs, k_xe = jax.random.split(key, 3)

    params = init_params(k_p)

    # Small batch: single grid step, whole batch resident on lanes.
    B = 16
    x_spat = jax.random.normal(k_xs, (B, 2, 4), jnp.float32)
    x_spec = jax.random.normal(k_xe, (B, 2, 4), jnp.float32)

    out = jax.block_until_ready(concat_model_forward(x_spat, x_spec, params))
    ref = reference_forward(x_spat, x_spec, params)
    assert out.shape == (B, 1)
    assert jnp.allclose(out, ref, atol=2e-5, rtol=2e-5), "Pallas output != reference"

    # Tiled ragged batch: 128-lane tiles, partial last block handled by Pallas
    # (no jnp.pad), output tail masked and sliced off.
    B2 = 200
    k_xs2, k_xe2 = jax.random.split(k_xe)
    x_spat2 = jax.random.normal(k_xs2, (B2, 2, 4), jnp.float32)
    x_spec2 = jax.random.normal(k_xe2, (B2, 2, 4), jnp.float32)
    out2 = jax.block_until_ready(
        concat_model_forward(x_spat2, x_spec2, params, batch_tile=128))
    ref2 = reference_forward(x_spat2, x_spec2, params)
    assert out2.shape == (B2, 1)
    assert jnp.allclose(out2, ref2, atol=2e-5, rtol=2e-5), "Tiled output != reference"

    # Packed entry point (preferred upstream layout: no wrapper repack at all).
    x_packed = pack_inputs(x_spat2, x_spec2)
    out3 = jax.block_until_ready(
        concat_model_forward_packed(x_packed, params, batch_tile=128))
    assert jnp.allclose(out3, ref2, atol=2e-5, rtol=2e-5), "Packed output != reference"

    print("KERNEL_OK")
</pallas_src>

<mosaic_0001>
module attributes {stable_mosaic.version = 11 : i64} {
  func.func @_fused_kernel(%arg0: i32, %arg1: memref<16x16xf32, #tpu.memory_space<vmem>>, %arg2: memref<10x12xf32, #tpu.memory_space<vmem>>, %arg3: memref<1x16xf32, #tpu.memory_space<vmem>>) attributes {dimension_semantics = [#tpu.dimension_semantics<parallel>], iteration_bounds = array<i64: 1>, scalar_prefetch = 0 : i64, scratch_operands = 0 : i64, tpu.core_type = #tpu.core_type<tc>, window_params = [{transform_indices = @transform_0, window_bounds = array<i64: 16, 16>}, {pipeline_mode = #tpu.pipeline_mode<synchronous>, transform_indices = @transform_1, window_bounds = array<i64: 10, 12>}, {transform_indices = @transform_2, window_bounds = array<i64: 1, 16>}]} {
    %c0 = arith.constant 0 : index
    %c0_0 = arith.constant 0 : index
    %0 = vector.load %arg1[%c0, %c0_0] : memref<16x16xf32, #tpu.memory_space<vmem>>, vector<8x16xf32>
    %c8 = arith.constant 8 : index
    %c0_1 = arith.constant 0 : index
    %1 = vector.load %arg1[%c8, %c0_1] : memref<16x16xf32, #tpu.memory_space<vmem>>, vector<8x16xf32>
    %c0_2 = arith.constant 0 : index
    %c0_3 = arith.constant 0 : index
    %2 = vector.load %arg2[%c0_2, %c0_3] : memref<10x12xf32, #tpu.memory_space<vmem>>, vector<10x12xf32>
    %3 = vector.extract_strided_slice %2 {offsets = [0, 0], sizes = [10, 8], strides = [1, 1]} : vector<10x12xf32> to vector<10x8xf32>
    %4 = vector.extract_strided_slice %2 {offsets = [0, 8], sizes = [10, 1], strides = [1, 1]} : vector<10x12xf32> to vector<10x1xf32>
    %5 = vector.extract_strided_slice %2 {offsets = [0, 9], sizes = [10, 1], strides = [1, 1]} : vector<10x12xf32> to vector<10x1xf32>
    %6 = vector.extract_strided_slice %2 {offsets = [0, 10], sizes = [8, 1], strides = [1, 1]} : vector<10x12xf32> to vector<8x1xf32>
    %7 = vector.extract_strided_slice %2 {offsets = [0, 11], sizes = [1, 1], strides = [1, 1]} : vector<10x12xf32> to vector<1x1xf32>
    %cst = arith.constant dense<0.000000e+00> : vector<10x16xf32>
    %8 = tpu.matmul %3, %0, %cst {dimension_numbers = #tpu.dot_dimension_numbers<[1], [0], [0], [1], [0, 0, 1, 1], [], []>} : vector<10x8xf32>, vector<8x16xf32>, vector<10x16xf32> -> vector<10x16xf32>
    %9 = vector.broadcast %4 : vector<10x1xf32> to vector<10x16xf32>
    %10 = arith.addf %8, %9 : vector<10x16xf32>
    %cst_4 = arith.constant 0.000000e+00 : f32
    %11 = vector.broadcast %cst_4 : f32 to vector<10x16xf32>
    %12 = arith.maximumf %10, %11 : vector<10x16xf32>
    %13 = vector.broadcast %5 : vector<10x1xf32> to vector<10x16xf32>
    %14 = arith.mulf %13, %12 : vector<10x16xf32>
    %cst_5 = arith.constant dense<0.000000e+00> : vector<16xf32>
    %15 = vector.multi_reduction <add>, %14, %cst_5 [0] : vector<10x16xf32> to vector<16xf32>
    %16 = vector.shape_cast %15 : vector<16xf32> to vector<1x16xf32>
    %17 = vector.broadcast %6 : vector<8x1xf32> to vector<8x16xf32>
    %18 = arith.mulf %17, %1 : vector<8x16xf32>
    %cst_6 = arith.constant dense<0.000000e+00> : vector<16xf32>
    %19 = vector.multi_reduction <add>, %18, %cst_6 [0] : vector<8x16xf32> to vector<16xf32>
    %20 = vector.shape_cast %19 : vector<16xf32> to vector<1x16xf32>
    %21 = arith.addf %16, %20 : vector<1x16xf32>
    %22 = vector.broadcast %7 : vector<1x1xf32> to vector<1x16xf32>
    %23 = arith.addf %21, %22 : vector<1x16xf32>
    %c0_7 = arith.constant 0 : index
    %c0_8 = arith.constant 0 : index
    %24 = vector.load %arg3[%c0_7, %c0_8] : memref<1x16xf32, #tpu.memory_space<vmem>>, vector<1x16xf32>
    tpu.vector_store %arg3[%c0_7, %c0_8], %23 {strides = array<i32>} : memref<1x16xf32, #tpu.memory_space<vmem>>, vector<1x16xf32>,
    return
  }
  func.func @transform_0(%arg0: i32) -> (i32, i32) {
    %c0_i32 = arith.constant 0 : i32
    %c0_i32_0 = arith.constant 0 : i32
    return %c0_i32, %arg0 : i32, i32
  }
  func.func @transform_1(%arg0: i32) -> (i32, i32) {
    %c0_i32 = arith.constant 0 : i32
    %c0_i32_0 = arith.constant 0 : i32
    %c0_i32_1 = arith.constant 0 : i32
    return %c0_i32, %c0_i32_0 : i32, i32
  }
  func.func @transform_2(%arg0: i32) -> (i32, i32) {
    %c0_i32 = arith.constant 0 : i32
    %c0_i32_0 = arith.constant 0 : i32
    return %c0_i32, %arg0 : i32, i32
  }
}

</mosaic_0001>

<bundles_post_ra>
// kernel: tpu_custom_call.1
= control target key start
LH: loop header
LB: loop body
LE: loop exit
PB: predicated region body
PF: predicated region fallthrough
CT: control target
= control target key end

     0   :  { %7 = vsyncpa [#allocation3], 0  ;;  %s318_s0 = inlined_call_operand.hbm [shape: f32[16,16], index: 0, kind: input, shape index: {}]   ;;  %s319_s1 = inlined_call_operand.hbm [shape: f32[10,12], index: 1, kind: input, shape index: {}]   ;;  %s320_s2 = inlined_call_operand.hbm [shape: f32[1,16], index: 2, kind: output, shape index: {}]  }
   0x1   :  { %8 = vsyncpa [#allocation6], 0 }
   0x2   :  { %9 = vsyncpa [#allocation4], 0  ;;  %s283_s9 = smov [#allocation2]  }
   0x3   :  { %s15_s10 = sshll.u32 %s283_s9, 4  ;;  %s16_s10 = int_to_ptr.vmem [resolvable:$true] %s15_s10 }
   0x4   :  { %s225_s11 = scalar_lea.vmem %s16_s10, 256  ;;  %p230_p1 = scmp.lt.s32.totalorder %s16_s10, %s16_s10 }
   0x5   :  { %p226_p0 = scmp.ne.s32.totalorder %s16_s10, %s225_s11  ;;  %p231_p2 = scmp.lt.s32.totalorder %s225_s11, %s225_s11 }
   0x7   :  { %p232_p3 = por %p231_p2, %p230_p1 }
   0x9   :  { %p233_p4 = pnand %p232_p3, %p226_p0 }
   0xb   :  { %236 = shalt.err (!%p233_p4)
}
   0xc   :  { %s284_s12 = smov 128   ;;  %s285_s13 = smov 8  }
   0xd   :  { %21 = dma.hbm_to_vmem [thread:$0]  %s318_s0, 256, %s16_s10, [#allocation3], %s284_s12, %s284_s12, %s285_s13  }
   0xe   :  { %s286_s16 = smov [#allocation5]  }
   0xf   :  { %s27_s17 = sshll.u32 %s286_s16, 4  ;;  %s28_s17 = int_to_ptr.vmem [resolvable:$true] %s27_s17 }
  0x10   :  { %s245_s18 = scalar_lea.vmem %s28_s17, 256  ;;  %p250_p6 = scmp.lt.s32.totalorder %s28_s17, %s28_s17 }
  0x11   :  { %p246_p5 = scmp.ne.s32.totalorder %s28_s17, %s245_s18  ;;  %p251_p7 = scmp.lt.s32.totalorder %s245_s18, %s245_s18 }
  0x13   :  { %p252_p8 = por %p251_p7, %p250_p6 }
  0x15   :  { %p253_p9 = pnand %p252_p8, %p246_p5 }
  0x17   :  { %256 = shalt.err (!%p253_p9)
}
  0x18   :  { %33 = dma.hbm_to_vmem [thread:$0]  %s319_s1, 256, %s28_s17, [#allocation6], %s284_s12, %s284_s12, %s285_s13  }
  0x19   :  { %277 = dma.done.wait [#allocation3], 256  }
  0x1a   :  { %278 = vsyncadd [#allocation3], 4294967040 }
  0x1b   :  { %279 = dma.done.wait [#allocation6], 256  }
  0x1c   :  { %280 = vsyncadd [#allocation6], 4294967040  ;;  %v287_v0 = vmov 8   ;;  %v288_v1 = vmov 9   ;;  %vm54_vm0 = vcmask 64512   ;;  %v40_v2 = vld [vmem:[#allocation2] sm:$0xff] }
  0x1d   :  { %212 = vset.pattern.permute.xlu0 %v287_v0  ;;  %213 = vset.pattern.permute.xlu1 %v288_v1  ;;  %v42_v3 = vld [vmem:[#allocation5] sm:$0xff]  ;;  %v43_v4 = vld [vmem:[#allocation5 + $0x8] sm:$0x3]  ;;  %v289_v5 = vmov 10   ;;  %v290_v6 = vmov 11   ;;  %v41_v10 = vld [vmem:[#allocation2 + $0x8] sm:$0xff] }
  0x1e   :  { %198 = vmatprep.subr.mxu0 %v40_v2  ;;  %200 = vmatprep.mubr.msk.f32.mxu0 %vm54_vm0, %v42_v3  ;;  %vm146_vm1 = vcmask 130048   ;;  %vm148_vm2 = vcmask 123904   ;;  %s291_s0 = smov [#allocation7]   ;;  %vm175_vm3 = vcmask 122880  }
  0x1f   :  { %199 = vmatpush3.msra.mxu0 %v40_v2  ;;  %46 = vperm.xlu0 %212, %v42_v3   ;;  %s183_s1 = sshll.u32 %s291_s0, 4  ;;  %s184_s1 = int_to_ptr.vmem [resolvable:$true] %s183_s1 }
  0x20   :  { %201 = vmatmul.mubr.msk.f32.vlgmr.msra.gmra.mxu0 %vm54_vm0, %v43_v4  ;;  %137 = vperm.xlu1 %213, %v42_v3   ;;  %s257_s21 = scalar_lea.vmem %s184_s1, 16  ;;  %s261_s22 = scalar_lea.vmem %s184_s1, 32 }
  0x21   :  { %p258_p10 = scmp.ne.s32.totalorder %s184_s1, %s257_s21  ;;  %p262_p11 = scmp.lt.s32.totalorder %s184_s1, %s184_s1 }
  0x22   :  { %p263_p12 = scmp.lt.s32.totalorder %s261_s22, %s257_s21 }
  0x23   :  { %51 = vperm.xlu0 %212, %v43_v4  }
  0x24   :  { %141 = vperm.xlu1 %213, %v43_v4   ;;  %p264_p13 = por %p263_p12, %p262_p11 }
  0x26   :  { %p265_p0 = pnand %p264_p13, %p258_p10 }
  0x27   :  { %214 = vset.pattern.permute.xlu0 %v289_v5 }
  0x28   :  { %158 = vperm.xlu0 %214, %v42_v3   ;;  %215 = vset.pattern.permute.xlu1 %v290_v6 }
  0x29   :  { %171 = vperm.xlu1 %215, %v42_v3  }
  0x2c   :  { %216 = vset.pattern.permute.xlu0 %v290_v6 }
  0x9a   :  { %v47_v7 = vpop.permute.xlu0 %46 }
  0x9b   :  { %v138_v12 = vpop.permute.xlu1 %137 }
  0x9e   :  { %v52_v8 = vpop.permute.xlu0 %51 }
  0x9f   :  { %v142_v20 = vpop.permute.xlu1 %141 }
  0xa3   :  { %v159_v9 = vpop.permute.xlu0 %158 }
  0xa4   :  { %v161_v11 = vmul.f32 %v159_v9, %v41_v10  ;;  %v172_v38 = vpop.permute.xlu1 %171 }
  0xa6   :  { %v162_v13 = vsel %vm146_vm1, %v161_v11, 0.0 }
  0xa7   :  { %v163_v16 = vrot.slane %v162_v13, 4 }
  0xa9   :  { %v164_v23 = vadd.f32 %v163_v16, %v162_v13 }
  0xab   :  { %v165_v27 = vrot.slane %v164_v23, 2 }
  0xad   :  { %v166_v30 = vadd.f32 %v165_v27, %v164_v23 }
  0xaf   :  { %v167_v34 = vrot.slane %v166_v30, 1 }
  0xb1   :  { %v168_v37 = vadd.f32 %v167_v34, %v166_v30 }
  0xe0   :  { %v202_v14 = vpop.f32.mrf.mxu0 }
  0xe1   :  { %v131_v15 = vadd.f32 %v202_v14, %v52_v8 }
  0xe2   :  { %v125_v17 = vpop.f32.mrf.mxu0 }
  0xe3   :  { %v135_v18 = vmax.f32 %v131_v15, 0.0  ;;  %v126_v19 = vadd.f32 %v125_v17, %v47_v7 }
  0xe5   :  { %v145_v21 = vmul.f32 %v142_v20, %v135_v18  ;;  %v134_v22 = vmax.f32 %v126_v19, 0.0 }
  0xe7   :  { %v144_v24 = vmul.f32 %v138_v12, %v134_v22  ;;  %v149_v25 = vsel %vm148_vm2, %v145_v21, 0.0 }
  0xe9   :  { %v147_v26 = vsel %vm146_vm1, %v144_v24, 0.0 }
  0xea   :  { %v150_v28 = vadd.f32 %v149_v25, %v147_v26 }
  0xec   :  { %v151_v29 = vrot.slane %v150_v28, 4 }
  0xee   :  { %v152_v31 = vadd.f32 %v151_v29, %v150_v28 }
  0xf0   :  { %v153_v32 = vrot.slane %v152_v31, 2 }
  0xf2   :  { %v154_v33 = vadd.f32 %v153_v32, %v152_v31 }
  0xf4   :  { %v155_v35 = vrot.slane %v154_v33, 1 }
  0xf6   :  { %v156_v36 = vadd.f32 %v155_v35, %v154_v33 }
  0xf8   :  { %v169_v39 = vadd.f32 %v168_v37, %v156_v36 }
  0xfa   :  { %v174_v40 = vadd.f32 %v172_v38, %v169_v39 }
  0xfc   :  { %176 = vst.msk [vmem:[#allocation7] sm:$0x1] %vm175_vm3, %v174_v40 }
  0xfd   :  { %268 = shalt.err (!%p265_p0)
}
  0xfe   :  { %186 = dma.vmem_to_hbm [thread:$0]  %s184_s1, 16, %s320_s2, [#allocation4]  }
  0xff   :  { %281 = dma.done.wait [#allocation4], 16  }
 0x100   :  { %282 = vsyncadd [#allocation4], 4294967280 }
 0x101   :  { %190 = vsyncpa [#allocation3], 1 }
 0x102   :  { %191 = vsyncpa [#allocation6], 1 }
 0x103   :  { %192 = vsyncpa [#allocation4], 1 }

</bundles_post_ra>
